<compile_context>
chip_gen: v7x
topology: tpu7x:2x2x1
jax: 0.10.0
libtpu: 0.0.40
codegen_flags: <defaults>
</compile_context>

<pallas_src>
import jax
import jax.numpy as jnp
from jax.experimental import pallas as pl
from jax.experimental.pallas import tpu as pltpu

EPS = 1e-06


def _round_up(x, m):
    return ((x + m - 1) // m) * m


def _dice_loss_kernel(pred_ref, gt_ref, w_ref, out_ref, ov_acc, tot_acc):
    # pred_ref / gt_ref: (TILE_N, TILE_HW) native dtype; w_ref: (TILE_N, 1) f32
    # out_ref: (1, 8, 128) f32 per-row-tile partial sum (broadcast-filled)
    # ov_acc / tot_acc: (TILE_N, 1) f32 scratch accumulators over the HW axis
    k = pl.program_id(1)

    @pl.when(k == 0)
    def _():
        ov_acc[...] = jnp.zeros_like(ov_acc)
        tot_acc[...] = jnp.zeros_like(tot_acc)

    # Cast to f32 *inside* the kernel so bf16/f16 heatmaps move half the HBM bytes.
    p = pred_ref[...].astype(jnp.float32)
    g = gt_ref[...].astype(jnp.float32)

    ov_acc[...] += jnp.sum(p * g, axis=1, keepdims=True)
    tot_acc[...] += jnp.sum(p * p + g * g, axis=1, keepdims=True)

    @pl.when(k == pl.num_programs(1) - 1)
    def _():
        w = w_ref[...]  # (TILE_N, 1) f32; padded tail rows carry w == 0
        dice = (2.0 * ov_acc[...] + EPS) / (tot_acc[...] + EPS) * w
        partial = jnp.sum(dice)  # weighted dice sum for this row tile (padded rows add 0)
        out_ref[...] = jnp.broadcast_to(partial, out_ref.shape)


def heatmap_loss(pred_hm, gt_hm, joints_weight):
    """Modified dice loss, matching the PyTorch Heatmap_Loss.forward.

    pred_hm, gt_hm: (B, K, H, W) float (any float dtype; cast happens in-kernel)
    joints_weight:  (B, K) bool or float valid flags
    returns: scalar float32 loss
    """
    assert pred_hm.ndim == 4, "Only works with batches of heatmap (B,K,H,W)"
    B, K, H, W = pred_hm.shape
    N, HW = B * K, H * W

    itemsize = jnp.dtype(pred_hm.dtype).itemsize

    # --- tile sizing (per-generation safe VMEM budget) ------------------------
    # Keep 2 inputs x 2 pipeline buffers x block_bytes <= 16 MiB, and raise the
    # scoped VMEM limit to 32 MiB explicitly (fits v5e/v6e/v7x physical VMEM).
    per_block_budget = 4 * 1024 * 1024  # bytes per single input block
    TILE_HW = min(_round_up(HW, 128), 4096)
    HW_pad = _round_up(HW, TILE_HW)
    TILE_N = max(8, min(512, (per_block_budget // (TILE_HW * itemsize)) // 8 * 8))
    TILE_N = min(TILE_N, _round_up(N, 8))
    N_pad = _round_up(N, TILE_N)

    num_n_tiles = N_pad // TILE_N
    num_hw_tiles = HW_pad // TILE_HW

    # --- flatten / pad ---------------------------------------------------------
    pred2d = pred_hm.reshape(N, HW)                       # native dtype (no f32 copy in HBM)
    gt2d = gt_hm.reshape(N, HW)
    w2d = joints_weight.reshape(N, 1).astype(jnp.float32)  # tiny; cast in wrapper is fine

    if N_pad != N or HW_pad != HW:
        pred2d = jnp.pad(pred2d, ((0, N_pad - N), (0, HW_pad - HW)))
        gt2d = jnp.pad(gt2d, ((0, N_pad - N), (0, HW_pad - HW)))
    if N_pad != N:
        # Zero weight on padded tail rows -> their dice contribution is exactly 0.
        w2d = jnp.pad(w2d, ((0, N_pad - N), (0, 0)))

    partials = pl.pallas_call(
        _dice_loss_kernel,
        out_shape=jax.ShapeDtypeStruct((num_n_tiles, 8, 128), jnp.float32),
        grid_spec=pltpu.PrefetchScalarGridSpec(
            num_scalar_prefetch=0,
            grid=(num_n_tiles, num_hw_tiles),              # reduction (HW) axis last
            in_specs=[
                pl.BlockSpec((TILE_N, TILE_HW), lambda i, k: (i, k)),
                pl.BlockSpec((TILE_N, TILE_HW), lambda i, k: (i, k)),
                pl.BlockSpec((TILE_N, 1), lambda i, k: (i, 0)),
            ],
            out_specs=pl.BlockSpec((1, 8, 128), lambda i, k: (i, 0, 0)),
            scratch_shapes=[
                pltpu.VMEM((TILE_N, 1), jnp.float32),      # overlap accumulator
                pltpu.VMEM((TILE_N, 1), jnp.float32),      # p^2 + g^2 accumulator
            ],
        ),
        compiler_params=pltpu.CompilerParams(
            dimension_semantics=("parallel", "arbitrary"),
            vmem_limit_bytes=32 * 1024 * 1024,
        ),
    )(pred2d, gt2d, w2d)

    # mean(1 - dice) over the true N joints == 1 - sum(dice) / N  (padded rows add 0).
    dice_sum = jnp.sum(partials[:, 0, 0])
    return 1.0 - dice_sum / jnp.float32(N)


def _ref_loss(pred_hm, gt_hm, joints_weight):
    p = pred_hm.astype(jnp.float32)
    g = gt_hm.astype(jnp.float32)
    w = joints_weight.astype(jnp.float32)
    overlap = jnp.sum(p * g, axis=(2, 3))
    total = jnp.sum(p ** 2, axis=(2, 3)) + jnp.sum(g ** 2, axis=(2, 3))
    dice = (2.0 * overlap + EPS) / (total + EPS) * w
    return jnp.mean(1.0 - dice)


if __name__ == "__main__":
    key = jax.random.PRNGKey(0)

    # --- test 1: baseline small shapes (f32) ----------------------------------
    k1, k2, k3, key = jax.random.split(key, 4)
    B, K, H, W = 2, 4, 16, 16
    pred_hm = jax.nn.sigmoid(jax.random.normal(k1, (B, K, H, W), dtype=jnp.float32))
    gt_hm = jax.nn.sigmoid(jax.random.normal(k2, (B, K, H, W), dtype=jnp.float32))
    joints_weight = jax.random.bernoulli(k3, p=0.8, shape=(B, K))

    loss = heatmap_loss(pred_hm, gt_hm, joints_weight)
    jax.block_until_ready(loss)
    ref = _ref_loss(pred_hm, gt_hm, joints_weight)
    assert jnp.allclose(loss, ref, rtol=1e-5, atol=1e-6), (loss, ref)

    # --- test 2: non-aligned shapes exercise the pad/mask path -----------------
    k1, k2, k3, key = jax.random.split(key, 4)
    B, K, H, W = 2, 3, 10, 10
    pred_hm = jax.nn.sigmoid(jax.random.normal(k1, (B, K, H, W), dtype=jnp.float32))
    gt_hm = jax.nn.sigmoid(jax.random.normal(k2, (B, K, H, W), dtype=jnp.float32))
    joints_weight = jax.random.bernoulli(k3, p=0.8, shape=(B, K))

    loss = heatmap_loss(pred_hm, gt_hm, joints_weight)
    jax.block_until_ready(loss)
    ref = _ref_loss(pred_hm, gt_hm, joints_weight)
    assert jnp.allclose(loss, ref, rtol=1e-5, atol=1e-6), (loss, ref)

    # --- test 3: bf16 inputs exercise the in-kernel f32 cast path --------------
    k1, k2, k3, key = jax.random.split(key, 4)
    B, K, H, W = 2, 4, 16, 16
    pred_hm = jax.nn.sigmoid(
        jax.random.normal(k1, (B, K, H, W), dtype=jnp.float32)).astype(jnp.bfloat16)
    gt_hm = jax.nn.sigmoid(
        jax.random.normal(k2, (B, K, H, W), dtype=jnp.float32)).astype(jnp.bfloat16)
    joints_weight = jax.random.bernoulli(k3, p=0.8, shape=(B, K))

    loss = heatmap_loss(pred_hm, gt_hm, joints_weight)
    jax.block_until_ready(loss)
    ref = _ref_loss(pred_hm, gt_hm, joints_weight)
    assert jnp.allclose(loss, ref, rtol=1e-4, atol=1e-5), (loss, ref)

    print("KERNEL_OK")
</pallas_src>

<mosaic_0001>
module attributes {stable_mosaic.version = 11 : i64} {
  func.func @_dice_loss_kernel(%arg0: i32, %arg1: i32, %arg2: memref<8x256xf32, #tpu.memory_space<vmem>>, %arg3: memref<8x256xf32, #tpu.memory_space<vmem>>, %arg4: memref<8x1xf32, #tpu.memory_space<vmem>>, %arg5: memref<1x8x128xf32, #tpu.memory_space<vmem>>, %arg6: memref<8x1xf32, #tpu.memory_space<vmem>>, %arg7: memref<8x1xf32, #tpu.memory_space<vmem>>) attributes {dimension_semantics = [#tpu.dimension_semantics<parallel>, #tpu.dimension_semantics<arbitrary>], iteration_bounds = array<i64: 1, 1>, scalar_prefetch = 0 : i64, scratch_operands = 2 : i64, tpu.core_type = #tpu.core_type<tc>, window_params = [{transform_indices = @transform_0, window_bounds = array<i64: 8, 256>}, {transform_indices = @transform_1, window_bounds = array<i64: 8, 256>}, {transform_indices = @transform_2, window_bounds = array<i64: 8, 1>}, {transform_indices = @transform_3, window_bounds = array<i64: 1, 8, 128>}]} {
    %c0_i32 = arith.constant 0 : i32
    %0 = arith.cmpi eq, %arg1, %c0_i32 : i32
    %1 = arith.extui %0 : i1 to i32
    %c0_i32_0 = arith.constant 0 : i32
    %2 = arith.cmpi ne, %1, %c0_i32_0 : i32
    scf.if %2 {
      %cst_15 = arith.constant 0.000000e+00 : f32
      %22 = vector.broadcast %cst_15 : f32 to vector<8x1xf32>
      %c0_16 = arith.constant 0 : index
      %c0_17 = arith.constant 0 : index
      %23 = vector.load %arg6[%c0_16, %c0_17] : memref<8x1xf32, #tpu.memory_space<vmem>>, vector<8x1xf32>
      tpu.vector_store %arg6[%c0_16, %c0_17], %22 {strides = array<i32>} : memref<8x1xf32, #tpu.memory_space<vmem>>, vector<8x1xf32>,
      %cst_18 = arith.constant 0.000000e+00 : f32
      %24 = vector.broadcast %cst_18 : f32 to vector<8x1xf32>
      %c0_19 = arith.constant 0 : index
      %c0_20 = arith.constant 0 : index
      %25 = vector.load %arg7[%c0_19, %c0_20] : memref<8x1xf32, #tpu.memory_space<vmem>>, vector<8x1xf32>
      tpu.vector_store %arg7[%c0_19, %c0_20], %24 {strides = array<i32>} : memref<8x1xf32, #tpu.memory_space<vmem>>, vector<8x1xf32>,
    } else {
    }
    %c0 = arith.constant 0 : index
    %c0_1 = arith.constant 0 : index
    %3 = vector.load %arg2[%c0, %c0_1] : memref<8x256xf32, #tpu.memory_space<vmem>>, vector<8x256xf32>
    %c0_2 = arith.constant 0 : index
    %c0_3 = arith.constant 0 : index
    %4 = vector.load %arg3[%c0_2, %c0_3] : memref<8x256xf32, #tpu.memory_space<vmem>>, vector<8x256xf32>
    %c0_4 = arith.constant 0 : index
    %c0_5 = arith.constant 0 : index
    %5 = vector.load %arg6[%c0_4, %c0_5] : memref<8x1xf32, #tpu.memory_space<vmem>>, vector<8x1xf32>
    %6 = arith.mulf %3, %4 : vector<8x256xf32>
    %cst = arith.constant dense<0.000000e+00> : vector<8xf32>
    %7 = vector.multi_reduction <add>, %6, %cst [1] : vector<8x256xf32> to vector<8xf32>
    %8 = vector.shape_cast %7 : vector<8xf32> to vector<8x1xf32>
    %9 = arith.addf %5, %8 : vector<8x1xf32>
    %c0_6 = arith.constant 0 : index
    %c0_7 = arith.constant 0 : index
    %10 = vector.load %arg6[%c0_6, %c0_7] : memref<8x1xf32, #tpu.memory_space<vmem>>, vector<8x1xf32>
    tpu.vector_store %arg6[%c0_6, %c0_7], %9 {strides = array<i32>} : memref<8x1xf32, #tpu.memory_space<vmem>>, vector<8x1xf32>,
    %c0_8 = arith.constant 0 : index
    %c0_9 = arith.constant 0 : index
    %11 = vector.load %arg7[%c0_8, %c0_9] : memref<8x1xf32, #tpu.memory_space<vmem>>, vector<8x1xf32>
    %12 = arith.mulf %3, %3 : vector<8x256xf32>
    %13 = arith.mulf %4, %4 : vector<8x256xf32>
    %14 = arith.addf %12, %13 : vector<8x256xf32>
    %cst_10 = arith.constant dense<0.000000e+00> : vector<8xf32>
    %15 = vector.multi_reduction <add>, %14, %cst_10 [1] : vector<8x256xf32> to vector<8xf32>
    %16 = vector.shape_cast %15 : vector<8xf32> to vector<8x1xf32>
    %17 = arith.addf %11, %16 : vector<8x1xf32>
    %c0_11 = arith.constant 0 : index
    %c0_12 = arith.constant 0 : index
    %18 = vector.load %arg7[%c0_11, %c0_12] : memref<8x1xf32, #tpu.memory_space<vmem>>, vector<8x1xf32>
    tpu.vector_store %arg7[%c0_11, %c0_12], %17 {strides = array<i32>} : memref<8x1xf32, #tpu.memory_space<vmem>>, vector<8x1xf32>,
    %c0_i32_13 = arith.constant 0 : i32
    %19 = arith.cmpi eq, %arg1, %c0_i32_13 : i32
    %20 = arith.extui %19 : i1 to i32
    %c0_i32_14 = arith.constant 0 : i32
    %21 = arith.cmpi ne, %20, %c0_i32_14 : i32
    scf.if %21 {
      %c0_15 = arith.constant 0 : index
      %c0_16 = arith.constant 0 : index
      %22 = vector.load %arg4[%c0_15, %c0_16] : memref<8x1xf32, #tpu.memory_space<vmem>>, vector<8x1xf32>
      %c0_17 = arith.constant 0 : index
      %c0_18 = arith.constant 0 : index
      %23 = vector.load %arg6[%c0_17, %c0_18] : memref<8x1xf32, #tpu.memory_space<vmem>>, vector<8x1xf32>
      %cst_19 = arith.constant 2.000000e+00 : f32
      %24 = vector.broadcast %cst_19 : f32 to vector<8x1xf32>
      %25 = arith.mulf %24, %23 : vector<8x1xf32>
      %cst_20 = arith.constant 9.99999997E-7 : f32
      %26 = vector.broadcast %cst_20 : f32 to vector<8x1xf32>
      %27 = arith.addf %25, %26 : vector<8x1xf32>
      %c0_21 = arith.constant 0 : index
      %c0_22 = arith.constant 0 : index
      %28 = vector.load %arg7[%c0_21, %c0_22] : memref<8x1xf32, #tpu.memory_space<vmem>>, vector<8x1xf32>
      %cst_23 = arith.constant 9.99999997E-7 : f32
      %29 = vector.broadcast %cst_23 : f32 to vector<8x1xf32>
      %30 = arith.addf %28, %29 : vector<8x1xf32>
      %31 = arith.divf %27, %30 : vector<8x1xf32>
      %32 = arith.mulf %31, %22 : vector<8x1xf32>
      %33 = vector.shape_cast %32 : vector<8x1xf32> to vector<1x8x1xf32>
      %cst_24 = arith.constant dense<0.000000e+00> : vector<1xf32>
      %34 = vector.multi_reduction <add>, %33, %cst_24 [1, 2] : vector<1x8x1xf32> to vector<1xf32>
      %35 = vector.shape_cast %34 : vector<1xf32> to vector<1x1x1xf32>
      %36 = vector.extract %35[0, 0, 0] : f32 from vector<1x1x1xf32>
      %37 = vector.broadcast %36 : f32 to vector<1x8x128xf32>
      %c0_25 = arith.constant 0 : index
      %c0_26 = arith.constant 0 : index
      %c0_27 = arith.constant 0 : index
      %38 = vector.load %arg5[%c0_25, %c0_26, %c0_27] : memref<1x8x128xf32, #tpu.memory_space<vmem>>, vector<1x8x128xf32>
      tpu.vector_store %arg5[%c0_25, %c0_26, %c0_27], %37 {strides = array<i32>} : memref<1x8x128xf32, #tpu.memory_space<vmem>>, vector<1x8x128xf32>,
    } else {
    }
    return
  }
  func.func @transform_0(%arg0: i32, %arg1: i32) -> (i32, i32) {
    %c0_i32 = arith.constant 0 : i32
    return %arg0, %arg1 : i32, i32
  }
  func.func @transform_1(%arg0: i32, %arg1: i32) -> (i32, i32) {
    %c0_i32 = arith.constant 0 : i32
    return %arg0, %arg1 : i32, i32
  }
  func.func @transform_2(%arg0: i32, %arg1: i32) -> (i32, i32) {
    %c0_i32 = arith.constant 0 : i32
    %c0_i32_0 = arith.constant 0 : i32
    return %arg0, %c0_i32 : i32, i32
  }
  func.func @transform_3(%arg0: i32, %arg1: i32) -> (i32, i32, i32) {
    %c0_i32 = arith.constant 0 : i32
    %c0_i32_0 = arith.constant 0 : i32
    %c0_i32_1 = arith.constant 0 : i32
    return %arg0, %c0_i32, %c0_i32_0 : i32, i32, i32
  }
}

</mosaic_0001>

<bundles_post_ra>
// kernel: tpu_custom_call.1
= control target key start
LH: loop header
LB: loop body
LE: loop exit
PB: predicated region body
PF: predicated region fallthrough
CT: control target
= control target key end

     0   :  { %8 = vsyncpa [#allocation5], 0  ;;  %s259_s0 = inlined_call_operand.hbm [shape: f32[8,256], index: 0, kind: input, shape index: {}]   ;;  %s260_s1 = inlined_call_operand.hbm [shape: f32[8,256], index: 1, kind: input, shape index: {}]   ;;  %s261_s2 = inlined_call_operand.vmem [shape: f32[8,1], index: 2, kind: input, shape index: {}]   ;;  %s262_s3 = inlined_call_operand.hbm [shape: f32[1,8,128], index: 3, kind: output, shape index: {}]  }
   0x1   :  { %9 = vsyncpa [#allocation8], 0 }
   0x2   :  { %10 = vsyncpa [#allocation6], 0  ;;  %s191_s12 = smov [#allocation4]   ;;  %s192_s14 = smov [#allocation7]  }
   0x3   :  { %s17_s13 = sshll.u32 %s191_s12, 4  ;;  %s27_s15 = sshll.u32 %s192_s14, 4  ;;  %s18_s13 = int_to_ptr.vmem [resolvable:$true] %s17_s13  ;;  %s28_s15 = int_to_ptr.vmem [resolvable:$true] %s27_s15 }
   0x4   :  { %s119_s18 = scalar_lea.hbm %s259_s0, 256 }
   0x5   :  { %p120_p0 = scmp.ne.s32.totalorder %s259_s0, %s119_s18  ;;  %p123_p1 = scmp.lt.u32.totalorder %s119_s18, %s259_s0 }
   0x7   :  { %p125_p2 = pnand %p123_p1, %p120_p0 }
   0x9   :  { %128 = shalt.err (!%p125_p2)
}
   0xa   :  { %s129_s23 = scalar_lea.vmem %s18_s13, 256  ;;  %p134_p4 = scmp.lt.s32.totalorder %s18_s13, %s18_s13 }
   0xb   :  { %p130_p3 = scmp.ne.s32.totalorder %s18_s13, %s129_s23  ;;  %p135_p5 = scmp.lt.s32.totalorder %s129_s23, %s129_s23 }
   0xd   :  { %p136_p6 = por %p135_p5, %p134_p4 }
   0xf   :  { %p137_p7 = pnand %p136_p6, %p130_p3 }
  0x11   :  { %140 = shalt.err (!%p137_p7)
}
  0x12   :  { %20 = dma.hbm_to_vmem [thread:$0]  %s259_s0, 256, %s18_s13, [#allocation5]  }
  0x13   :  { %s141_s28 = scalar_lea.hbm %s260_s1, 256 }
  0x14   :  { %p142_p8 = scmp.ne.s32.totalorder %s260_s1, %s141_s28  ;;  %p145_p9 = scmp.lt.u32.totalorder %s141_s28, %s260_s1 }
  0x16   :  { %p147_p10 = pnand %p145_p9, %p142_p8 }
  0x18   :  { %150 = shalt.err (!%p147_p10)
}
  0x19   :  { %s151_s6 = scalar_lea.vmem %s28_s15, 256  ;;  %p156_p12 = scmp.lt.s32.totalorder %s28_s15, %s28_s15 }
  0x1a   :  { %p152_p11 = scmp.ne.s32.totalorder %s28_s15, %s151_s6  ;;  %p157_p13 = scmp.lt.s32.totalorder %s151_s6, %s151_s6 }
  0x1c   :  { %p158_p0 = por %p157_p13, %p156_p12 }
  0x1e   :  { %p159_p1 = pnand %p158_p0, %p152_p11 }
  0x20   :  { %162 = shalt.err (!%p159_p1)
}
  0x21   :  { %30 = dma.hbm_to_vmem [thread:$0]  %s260_s1, 256, %s28_s15, [#allocation8]  }
  0x22   :  { %185 = dma.done.wait [#allocation5], 256  }
  0x23   :  { %186 = vsyncadd [#allocation5], 4294967040 }
  0x24   :  { %187 = dma.done.wait [#allocation8], 256  }
  0x25   :  { %188 = vsyncadd [#allocation8], 4294967040  ;;  %vm43_vm0 = vcmask 7168   ;;  %v193_v0 = vmov 0.0   ;;  %v46_v1 = vld [vmem:[#allocation4] sm:$0xff]  ;;  %v47_v2 = vld [vmem:[#allocation4 + $0x8] sm:$0xff] }
  0x26   :  { %45 = vst.msk [vmem:[#allocation3] sm:$0xff] %vm43_vm0, %v193_v0  ;;  %44 = vst.msk [vmem:[#allocation2] sm:$0xff] %vm43_vm0, %v193_v0  ;;  %v48_v3 = vld [vmem:[#allocation7] sm:$0xff]  ;;  %v49_v4 = vld [vmem:[#allocation7 + $0x8] sm:$0xff]  ;;  %v60_v5 = vmul.f32 %v46_v1, %v46_v1  ;;  %v61_v6 = vmul.f32 %v47_v2, %v47_v2  ;;  %s194_s9 = smov [#allocation9]  }
  0x27   :  { %v62_v7 = vmul.f32 %v48_v3, %v48_v3  ;;  %v63_v8 = vmul.f32 %v49_v4, %v49_v4  ;;  %v51_v11 = vmul.f32 %v48_v3, %v46_v1  ;;  %v52_v12 = vmul.f32 %v49_v4, %v47_v2  ;;  %v74_v27 = vld [vmem:[%s261_s2] sm:$0xff]  ;;  %s101_s10 = sshll.u32 %s194_s9, 4  ;;  %s102_s10 = int_to_ptr.vmem [resolvable:$true] %s101_s10 }
  0x28   :  { %s163_s2 = scalar_lea.vmem %s102_s10, 128  ;;  %p168_p3 = scmp.lt.s32.totalorder %s102_s10, %s102_s10 }
  0x29   :  { %v64_v9 = vadd.f32 %v62_v7, %v60_v5  ;;  %v65_v10 = vadd.f32 %v63_v8, %v61_v6  ;;  %v53_v14 = vadd.f32 %v52_v12, %v51_v11  ;;  %p164_p2 = scmp.ne.s32.totalorder %s102_s10, %s163_s2  ;;  %p169_p4 = scmp.lt.s32.totalorder %s163_s2, %s163_s2 }
  0x2b   :  { %v66_v13 = vadd.f32 %v65_v10, %v64_v9  ;;  %p170_p5 = por %p169_p4, %p168_p3 }
  0x2d   :  { %67 = vadd.xlane.f32.xlu0 %v66_v13  ;;  %v59_v15 = vld [vmem:[#allocation3] sm:$0xff]  ;;  %v50_v18 = vld [vmem:[#allocation2] sm:$0xff]  ;;  %p171_p6 = pnand %p170_p5, %p164_p2 }
  0x31   :  { %54 = vadd.xlane.f32.xlu0 %v53_v14 }
  0xba   :  { %v68_v16 = vpop.xlane.xlu0 %67 }
  0xbb   :  { %v69_v17 = vadd.f32 %v68_v16, %v59_v15 }
  0xbd   :  { %70 = vst.msk [vmem:[#allocation3] sm:$0xff] %vm43_vm0, %v69_v17 }
  0xbe   :  { %v55_v19 = vpop.xlane.xlu0 %54 }
  0xbf   :  { %v56_v20 = vadd.f32 %v55_v19, %v50_v18 }
  0xc1   :  { %58 = vst.msk [vmem:[#allocation2] sm:$0xff] %vm43_vm0, %v56_v20 }
  0xc4   :  { %v78_v21 = vld [vmem:[#allocation3] sm:$0xff] }
  0xc5   :  { %v79_v22 = vadd.f32 1e-06, %v78_v21 }
  0xc7   :  { %117 = vrcp.f32 %v79_v22 }
  0xc8   :  { %v75_v23 = vld [vmem:[#allocation2] sm:$0xff] }
  0xc9   :  { %v76_v24 = vmul.f32 2.0, %v75_v23 }
  0xcb   :  { %v77_v25 = vadd.f32 1e-06, %v76_v24 }
  0xd1   :  { %v118_v26 = vpop.eup %117 }
  0xd2   :  { %v81_v28 = vmul.f32 %v118_v26, %v77_v25 }
  0xd4   :  { %v82_v29 = vmul.f32 %v81_v28, %v74_v27 }
  0xd6   :  { %v83_v30 = vsel %vm43_vm0, %v82_v29, 0.0 }
  0xd7   :  { %84 = vadd.xlane.f32.xlu1 %v83_v30 }
 0x164   :  { %v85_v31 = vpop.xlane.xlu1 %84 }
 0x165   :  { %v86_v32 = vrot.slane %v85_v31, 4 }
 0x167   :  { %v87_v33 = vadd.f32 %v86_v32, %v85_v31 }
 0x169   :  { %v88_v34 = vrot.slane %v87_v33, 2 }
 0x16b   :  { %v89_v35 = vadd.f32 %v88_v34, %v87_v33 }
 0x16d   :  { %v90_v36 = vrot.slane %v89_v35, 1 }
 0x16f   :  { %v91_v37 = vadd.f32 %v90_v36, %v89_v35 }
 0x171   :  { %111 = vpush %v91_v37 }
 0x1a2   :  { %s112_s11 = spop %111 }
 0x1a3   :  { %v93_v38 = vstv %s112_s11 }
 0x1a4   :  { %94 = vst [vmem:[#allocation9] sm:$0xff] %v93_v38 }
 0x1a5   :  { %174 = shalt.err (!%p171_p6)
}
 0x1a6   :  { %s175_s14 = scalar_lea.hbm %s262_s3, 128 }
 0x1a7   :  { %p176_p7 = scmp.ne.s32.totalorder %s262_s3, %s175_s14  ;;  %p179_p8 = scmp.lt.u32.totalorder %s175_s14, %s262_s3 }
 0x1a9   :  { %p181_p9 = pnand %p179_p8, %p176_p7 }
 0x1ab   :  { %184 = shalt.err (!%p181_p9)
}
 0x1ac   :  { %104 = dma.vmem_to_hbm [thread:$0]  %s102_s10, 128, %s262_s3, [#allocation6]  }
 0x1ad   :  { %189 = dma.done.wait [#allocation6], 128  }
 0x1ae   :  { %190 = vsyncadd [#allocation6], 4294967168 }
 0x1af   :  { %108 = vsyncpa [#allocation5], 1 }
 0x1b0   :  { %109 = vsyncpa [#allocation8], 1 }
 0x1b1   :  { %110 = vsyncpa [#allocation6], 1 }

</bundles_post_ra>
